<compile_context>
chip_gen: v7x
topology: tpu7x:2x2x1
jax: 0.10.0
libtpu: 0.0.40
codegen_flags: <defaults>
</compile_context>

<pallas_src>
import jax
import jax.numpy as jnp
from jax.experimental import pallas as pl
from jax.experimental.pallas import tpu as pltpu


# ------------------------------ static config -------------------------------

IN_CH = 3
KH = KW = 3
STRIDE, PAD = 2, 1
K_RAW = IN_CH * KH * KW                  # 27
K_PAD = ((K_RAW + 7) // 8) * 8           # 32  (sublane-aligned per-patch length)
PACK = 4                                 # spatial positions packed per row
KPK = PACK * K_PAD                       # 128 -> lane-dense contraction dim
OUT_PAD = 128                            # lane-dense head output width
# TODO(synk): on v6e/v7x (2x256^2 MXU) PACK=8 (K=256, conv out 256 lanes) fills
# the MXU better; PACK=4 is the safe common choice for v5e's 128-wide MXU.


# ----------------------------- fused Pallas kernel ---------------------------

def _make_fused_kernel(tile_n, tile_sp):
    """conv(matmul)+ReLU -> pooled accumulation -> proj -> fc2+ReLU -> fc3."""

    def kernel(p_ref, wc_ref, bc_ref, wp_ref, bp_ref,
               w2_ref, b2_ref, w3_ref, b3_ref, o_ref, acc_ref):
        s = pl.program_id(1)

        @pl.when(s == 0)
        def _():
            acc_ref[...] = jnp.zeros_like(acc_ref)

        # Stem conv as a 128-lane-dense MXU matmul over PACK-packed im2col rows.
        # The reshape only merges whole (tile_sp, 128) sublane tiles -> no copy.
        x = p_ref[...].reshape(tile_n * tile_sp, KPK)                  # bf16
        conv = jnp.dot(x, wc_ref[...], preferred_element_type=jnp.float32)
        conv = jnp.maximum(conv + bc_ref[...], 0.0)                    # f32
        # Global-average-pool partial sums stay in VMEM.  The PACK groups are
        # kept separate along lanes; the PACK-tiled w_proj folds them later.
        acc_ref[...] += conv.reshape(tile_n, tile_sp, -1).sum(axis=1)

        @pl.when(s == pl.num_programs(1) - 1)
        def _():
            # wp_ref already folds the 1/S pooling scale and the PACK-group sum.
            feat = jnp.dot(acc_ref[...].astype(jnp.bfloat16), wp_ref[...],
                           preferred_element_type=jnp.float32) + bp_ref[...]
            # NOTE: original forward computes relu(fc1(feat)) then immediately
            # overwrites it with relu(fc2(feat)); fc1 is dead and omitted.
            h2 = jnp.maximum(
                jnp.dot(feat.astype(jnp.bfloat16), w2_ref[...],
                        preferred_element_type=jnp.float32) + b2_ref[...], 0.0)
            out = jnp.dot(h2.astype(jnp.bfloat16), w3_ref[...],
                          preferred_element_type=jnp.float32) + b3_ref[...]
            o_ref[...] = out[:, None, :].astype(o_ref.dtype)   # lane-dense [tn,1,128]

    return kernel


# --------------------------------- JAX glue ----------------------------------

def im2col_packed(x):
    """NCHW -> PACK-packed patch rows [N, S//PACK, PACK*K_PAD] bf16, plus S.

    Per-patch element order is channel-major (c*kh*kw + i*kw + j), matching a
    PyTorch OIHW weight.reshape(O, C*kh*kw); zero-padded 27 -> 32 per patch.
    """
    N, C, H, W = x.shape
    xp = jnp.pad(x, ((0, 0), (0, 0), (PAD, PAD), (PAD, PAD)))
    OH = (H + 2 * PAD - KH) // STRIDE + 1
    OW = (W + 2 * PAD - KW) // STRIDE + 1
    cols = []
    for i in range(KH):
        for j in range(KW):
            cols.append(xp[:, :, i:i + STRIDE * OH:STRIDE, j:j + STRIDE * OW:STRIDE])
    p = jnp.stack(cols, axis=2)                              # (N, C, kh*kw, OH, OW)
    p = p.transpose(0, 3, 4, 1, 2).reshape(N, OH * OW, C * KH * KW)
    p = jnp.pad(p, ((0, 0), (0, 0), (0, K_PAD - C * KH * KW)))
    S = OH * OW
    # TODO(synk): at production CLIP resolutions the im2col should move
    # in-kernel (pl.ANY input + manual DMA, or 9 shifted matmuls accumulated
    # into acc) to kill the ~9x HBM read inflation of a materialized patch
    # matrix; negligible at these small shapes.
    assert S % (PACK * 8) == 0, "conv output spatial size must divide PACK*8"
    p = p.reshape(N, S // PACK, PACK * K_PAD)                # pack 4 patches / row
    return p.astype(jnp.bfloat16), S


def _pick_batch_tile(n, max_tile=128):
    """Largest divisor of n, <= max_tile, keeping >=2 blocks when n >= 2 (v7x)."""
    cap = min(max_tile, n)
    if n >= 2:
        cap = min(cap, max(n // 2, 1))
    best = 1
    for d in range(1, cap + 1):
        if n % d == 0:
            best = d
    return best


def _pick_spatial_tile(s_packed, tile_n, max_rows):
    """Largest multiple of 8 dividing s_packed with tile_n*tile <= max_rows."""
    assert s_packed % 8 == 0
    cap = max(8, min(s_packed, max_rows // max(tile_n, 1)))
    best = 8
    for t in range(8, cap + 1, 8):
        if s_packed % t == 0:
            best = t
    return best


def clip_model_forward(x, params, *, max_spatial_rows=16384, max_batch_tile=128):
    """Full fused forward of OpenAICLIPModel (scaled-down dims)."""
    N = x.shape[0]
    patches, S = im2col_packed(x)                   # [N, SP, 128] bf16, SP = S/4
    SP = patches.shape[1]

    C1 = params["w_conv"].shape[1]
    F = params["w_proj"].shape[1]
    H2 = params["w2"].shape[1]
    num_labels = params["w3"].shape[1]
    C1P = PACK * C1

    # Block-diagonal stem weight + PACK-tiled bias -> 128-lane-dense conv.
    w_blk = jnp.zeros((KPK, C1P), jnp.float32)
    for g in range(PACK):
        w_blk = w_blk.at[g * K_PAD:(g + 1) * K_PAD,
                         g * C1:(g + 1) * C1].set(params["w_conv"])
    b_blk = jnp.tile(params["b_conv"], (1, PACK))                     # (1, C1P)

    # Projection folds both the 1/S pooling scale and the PACK-group reduction.
    wp_t = jnp.tile(params["w_proj"], (PACK, 1)) * (1.0 / S)          # (C1P, F)

    # Lane-dense fc3: pad weights/bias to 128 output lanes, slice in wrapper.
    w3p = jnp.zeros((H2, OUT_PAD), jnp.float32).at[:, :num_labels].set(params["w3"])
    b3p = jnp.zeros((1, OUT_PAD), jnp.float32).at[:, :num_labels].set(params["b3"])

    # bf16 MXU operands (f32 accumulation inside the kernel).
    wc = w_blk.astype(jnp.bfloat16)
    wp = wp_t.astype(jnp.bfloat16)
    w2 = params["w2"].astype(jnp.bfloat16)
    w3b = w3p.astype(jnp.bfloat16)

    tile_n = _pick_batch_tile(N, max_batch_tile)
    tile_sp = _pick_spatial_tile(SP, tile_n, max_spatial_rows)
    grid = (N // tile_n, SP // tile_sp)

    flops = (2 * N * SP * KPK * C1P
             + 2 * N * (C1P * F + F * H2 + H2 * OUT_PAD))
    bytes_accessed = (patches.size * 2
                      + (wc.size + wp.size + w2.size + w3b.size) * 2
                      + (b_blk.size + params["b_proj"].size
                         + params["b2"].size + b3p.size) * 4
                      + N * OUT_PAD * 4)

    out = pl.pallas_call(
        _make_fused_kernel(tile_n, tile_sp),
        out_shape=jax.ShapeDtypeStruct((N, 1, OUT_PAD), jnp.float32),
        grid_spec=pltpu.PrefetchScalarGridSpec(
            num_scalar_prefetch=0,
            grid=grid,
            in_specs=[
                pl.BlockSpec((tile_n, tile_sp, KPK), lambda b, s: (b, s, 0)),
                pl.BlockSpec((KPK, C1P), lambda b, s: (0, 0)),
                pl.BlockSpec((1, C1P), lambda b, s: (0, 0)),
                pl.BlockSpec((C1P, F), lambda b, s: (0, 0)),
                pl.BlockSpec((1, F), lambda b, s: (0, 0)),
                pl.BlockSpec((F, H2), lambda b, s: (0, 0)),
                pl.BlockSpec((1, H2), lambda b, s: (0, 0)),
                pl.BlockSpec((H2, OUT_PAD), lambda b, s: (0, 0)),
                pl.BlockSpec((1, OUT_PAD), lambda b, s: (0, 0)),
            ],
            out_specs=pl.BlockSpec((tile_n, 1, OUT_PAD), lambda b, s: (b, 0, 0)),
            scratch_shapes=[pltpu.VMEM((tile_n, C1P), jnp.float32)],
        ),
        compiler_params=pltpu.CompilerParams(
            dimension_semantics=("parallel", "arbitrary"),
            # Re-derived against v7x's 64 MiB physical VMEM (headroom for Mosaic
            # scratch); also valid on v5e/v6e (128 MiB).
            vmem_limit_bytes=48 * 1024 * 1024,
        ),
        cost_estimate=pl.CostEstimate(
            flops=flops, transcendentals=0, bytes_accessed=bytes_accessed),
    )(patches, wc, b_blk, wp, params["b_proj"],
      w2, params["b2"], w3b, b3p)

    return out[:, 0, :num_labels]


def reference_forward(x, params):
    """Pure-jnp reference mirroring the kernel's bf16-operand / f32-acc math."""
    pb, S = im2col_packed(x)                         # bf16, [N, S/4, 128]
    N = x.shape[0]
    C1 = params["w_conv"].shape[1]
    patches = pb.reshape(N, S, K_PAD)
    conv = jnp.einsum("nsk,kc->nsc", patches,
                      params["w_conv"].astype(jnp.bfloat16),
                      preferred_element_type=jnp.float32)
    conv = jnp.maximum(conv + params["b_conv"], 0.0)
    # PACK-group partial pool sums in the same lane order the kernel uses.
    part = conv.reshape(N, S // PACK, PACK, C1).sum(axis=1).reshape(N, PACK * C1)
    wp_t = (jnp.tile(params["w_proj"], (PACK, 1)) * (1.0 / S)).astype(jnp.bfloat16)
    feat = jnp.dot(part.astype(jnp.bfloat16), wp_t,
                   preferred_element_type=jnp.float32) + params["b_proj"]
    # fc1 branch is dead in the original forward (overwritten) -> omitted.
    h2 = jnp.maximum(
        jnp.dot(feat.astype(jnp.bfloat16), params["w2"].astype(jnp.bfloat16),
                preferred_element_type=jnp.float32) + params["b2"], 0.0)
    return jnp.dot(h2.astype(jnp.bfloat16), params["w3"].astype(jnp.bfloat16),
                   preferred_element_type=jnp.float32) + params["b3"]


def make_params(key, in_ch=IN_CH, stem_ch=32, feat_dim=128, fc2_dim=64, num_labels=2):
    ks = jax.random.split(key, 8)

    def lin(k, fan_in, shape):
        return jax.random.normal(k, shape, jnp.float32) / jnp.sqrt(fan_in)

    k_real = in_ch * KH * KW
    # Stem conv weight with the contraction dim zero-padded 27 -> 32.
    w_conv = jnp.zeros((K_PAD, stem_ch), jnp.float32)
    w_conv = w_conv.at[:k_real].set(lin(ks[0], k_real, (k_real, stem_ch)))

    return {
        "w_conv": w_conv,
        "b_conv": lin(ks[1], k_real, (1, stem_ch)),
        # output projection to the CLIP feature dim (1024 -> scaled 128)
        "w_proj": lin(ks[2], stem_ch, (stem_ch, feat_dim)),
        "b_proj": lin(ks[3], stem_ch, (1, feat_dim)),
        # fc2: feat -> fc2_dim   (1024 -> 512, scaled 128 -> 64)
        "w2": lin(ks[4], feat_dim, (feat_dim, fc2_dim)),
        "b2": lin(ks[5], feat_dim, (1, fc2_dim)),
        # fc3: fc2_dim -> num_labels (512 -> 2, scaled 64 -> 2)
        "w3": lin(ks[6], fc2_dim, (fc2_dim, num_labels)),
        "b3": lin(ks[7], fc2_dim, (1, num_labels)),
    }


if __name__ == "__main__":
    key = jax.random.PRNGKey(0)
    k_x, k_p = jax.random.split(key)

    # Small NCHW images consistent with the forward; 2 labels.
    x = jax.random.normal(k_x, (2, 3, 16, 16), jnp.float32)
    params = make_params(k_p)

    ref = reference_forward(x, params)

    # Default (perf-oriented) tiling.
    out = jax.block_until_ready(jax.jit(clip_model_forward)(x, params))
    assert out.shape == (2, 2), out.shape
    assert jnp.allclose(out, ref, atol=2e-2, rtol=2e-2), "mismatch vs jnp reference"

    # Also exercise the multi-step spatial pool accumulation path.
    out2 = jax.block_until_ready(
        jax.jit(lambda xx, pp: clip_model_forward(xx, pp, max_spatial_rows=8))(x, params))
    assert jnp.allclose(out2, ref, atol=2e-2, rtol=2e-2), "mismatch (multi-step)"

    print("KERNEL_OK")
</pallas_src>

<mosaic_0001>
module attributes {stable_mosaic.version = 11 : i64} {
  func.func @kernel(%arg0: i32, %arg1: i32, %arg2: memref<1x16x128xbf16, #tpu.memory_space<vmem>>, %arg3: memref<128x128xbf16, #tpu.memory_space<vmem>>, %arg4: memref<1x128xf32, #tpu.memory_space<vmem>>, %arg5: memref<128x128xbf16, #tpu.memory_space<vmem>>, %arg6: memref<1x128xf32, #tpu.memory_space<vmem>>, %arg7: memref<128x64xbf16, #tpu.memory_space<vmem>>, %arg8: memref<1x64xf32, #tpu.memory_space<vmem>>, %arg9: memref<64x128xbf16, #tpu.memory_space<vmem>>, %arg10: memref<1x128xf32, #tpu.memory_space<vmem>>, %arg11: memref<1x1x128xf32, #tpu.memory_space<vmem>>, %arg12: memref<1x128xf32, #tpu.memory_space<vmem>>) attributes {dimension_semantics = [#tpu.dimension_semantics<parallel>, #tpu.dimension_semantics<arbitrary>], iteration_bounds = array<i64: 2, 1>, scalar_prefetch = 0 : i64, scratch_operands = 1 : i64, tpu.core_type = #tpu.core_type<tc>, window_params = [{transform_indices = @transform_0, window_bounds = array<i64: 1, 16, 128>}, {pipeline_mode = #tpu.pipeline_mode<synchronous>, transform_indices = @transform_1, window_bounds = array<i64: 128, 128>}, {pipeline_mode = #tpu.pipeline_mode<synchronous>, transform_indices = @transform_2, window_bounds = array<i64: 1, 128>}, {pipeline_mode = #tpu.pipeline_mode<synchronous>, transform_indices = @transform_3, window_bounds = array<i64: 128, 128>}, {pipeline_mode = #tpu.pipeline_mode<synchronous>, transform_indices = @transform_4, window_bounds = array<i64: 1, 128>}, {pipeline_mode = #tpu.pipeline_mode<synchronous>, transform_indices = @transform_5, window_bounds = array<i64: 128, 64>}, {pipeline_mode = #tpu.pipeline_mode<synchronous>, transform_indices = @transform_6, window_bounds = array<i64: 1, 64>}, {pipeline_mode = #tpu.pipeline_mode<synchronous>, transform_indices = @transform_7, window_bounds = array<i64: 64, 128>}, {pipeline_mode = #tpu.pipeline_mode<synchronous>, transform_indices = @transform_8, window_bounds = array<i64: 1, 128>}, {transform_indices = @transform_9, window_bounds = array<i64: 1, 1, 128>}]} {
    %c0_i32 = arith.constant 0 : i32
    %0 = arith.cmpi eq, %arg1, %c0_i32 : i32
    %1 = arith.extui %0 : i1 to i32
    %c0_i32_0 = arith.constant 0 : i32
    %2 = arith.cmpi ne, %1, %c0_i32_0 : i32
    scf.if %2 {
      %cst_15 = arith.constant 0.000000e+00 : f32
      %20 = vector.broadcast %cst_15 : f32 to vector<1x128xf32>
      %c0_16 = arith.constant 0 : index
      %c0_17 = arith.constant 0 : index
      %21 = vector.load %arg12[%c0_16, %c0_17] : memref<1x128xf32, #tpu.memory_space<vmem>>, vector<1x128xf32>
      tpu.vector_store %arg12[%c0_16, %c0_17], %20 {strides = array<i32>} : memref<1x128xf32, #tpu.memory_space<vmem>>, vector<1x128xf32>,
    } else {
    }
    %c0 = arith.constant 0 : index
    %c0_1 = arith.constant 0 : index
    %c0_2 = arith.constant 0 : index
    %3 = vector.load %arg2[%c0, %c0_1, %c0_2] : memref<1x16x128xbf16, #tpu.memory_space<vmem>>, vector<1x16x128xbf16>
    %4 = vector.shape_cast %3 : vector<1x16x128xbf16> to vector<16x128xbf16>
    %c0_3 = arith.constant 0 : index
    %c0_4 = arith.constant 0 : index
    %5 = vector.load %arg3[%c0_3, %c0_4] : memref<128x128xbf16, #tpu.memory_space<vmem>>, vector<128x128xbf16>
    %cst = arith.constant dense<0.000000e+00> : vector<16x128xf32>
    %6 = tpu.matmul %4, %5, %cst {dimension_numbers = #tpu.dot_dimension_numbers<[1], [0], [0], [1], [0, 0, 1, 1], [], []>} : vector<16x128xbf16>, vector<128x128xbf16>, vector<16x128xf32> -> vector<16x128xf32>
    %c0_5 = arith.constant 0 : index
    %c0_6 = arith.constant 0 : index
    %7 = vector.load %arg4[%c0_5, %c0_6] : memref<1x128xf32, #tpu.memory_space<vmem>>, vector<1x128xf32>
    %8 = vector.broadcast %7 : vector<1x128xf32> to vector<16x128xf32>
    %9 = arith.addf %6, %8 : vector<16x128xf32>
    %cst_7 = arith.constant 0.000000e+00 : f32
    %10 = vector.broadcast %cst_7 : f32 to vector<16x128xf32>
    %11 = arith.maximumf %9, %10 : vector<16x128xf32>
    %c0_8 = arith.constant 0 : index
    %c0_9 = arith.constant 0 : index
    %12 = vector.load %arg12[%c0_8, %c0_9] : memref<1x128xf32, #tpu.memory_space<vmem>>, vector<1x128xf32>
    %13 = vector.shape_cast %11 : vector<16x128xf32> to vector<1x16x128xf32>
    %cst_10 = arith.constant dense<0.000000e+00> : vector<1x128xf32>
    %14 = vector.multi_reduction <add>, %13, %cst_10 [1] : vector<1x16x128xf32> to vector<1x128xf32>
    %15 = arith.addf %12, %14 : vector<1x128xf32>
    %c0_11 = arith.constant 0 : index
    %c0_12 = arith.constant 0 : index
    %16 = vector.load %arg12[%c0_11, %c0_12] : memref<1x128xf32, #tpu.memory_space<vmem>>, vector<1x128xf32>
    tpu.vector_store %arg12[%c0_11, %c0_12], %15 {strides = array<i32>} : memref<1x128xf32, #tpu.memory_space<vmem>>, vector<1x128xf32>,
    %c0_i32_13 = arith.constant 0 : i32
    %17 = arith.cmpi eq, %arg1, %c0_i32_13 : i32
    %18 = arith.extui %17 : i1 to i32
    %c0_i32_14 = arith.constant 0 : i32
    %19 = arith.cmpi ne, %18, %c0_i32_14 : i32
    scf.if %19 {
      %c0_15 = arith.constant 0 : index
      %c0_16 = arith.constant 0 : index
      %20 = vector.load %arg12[%c0_15, %c0_16] : memref<1x128xf32, #tpu.memory_space<vmem>>, vector<1x128xf32>
      %21 = arith.truncf %20 : vector<1x128xf32> to vector<1x128xbf16>
      %c0_17 = arith.constant 0 : index
      %c0_18 = arith.constant 0 : index
      %22 = vector.load %arg5[%c0_17, %c0_18] : memref<128x128xbf16, #tpu.memory_space<vmem>>, vector<128x128xbf16>
      %cst_19 = arith.constant dense<0.000000e+00> : vector<1x128xf32>
      %23 = tpu.matmul %21, %22, %cst_19 {dimension_numbers = #tpu.dot_dimension_numbers<[1], [0], [0], [1], [0, 0, 1, 1], [], []>} : vector<1x128xbf16>, vector<128x128xbf16>, vector<1x128xf32> -> vector<1x128xf32>
      %c0_20 = arith.constant 0 : index
      %c0_21 = arith.constant 0 : index
      %24 = vector.load %arg6[%c0_20, %c0_21] : memref<1x128xf32, #tpu.memory_space<vmem>>, vector<1x128xf32>
      %25 = arith.addf %23, %24 : vector<1x128xf32>
      %26 = arith.truncf %25 : vector<1x128xf32> to vector<1x128xbf16>
      %c0_22 = arith.constant 0 : index
      %c0_23 = arith.constant 0 : index
      %27 = vector.load %arg7[%c0_22, %c0_23] : memref<128x64xbf16, #tpu.memory_space<vmem>>, vector<128x64xbf16>
      %cst_24 = arith.constant dense<0.000000e+00> : vector<1x64xf32>
      %28 = tpu.matmul %26, %27, %cst_24 {dimension_numbers = #tpu.dot_dimension_numbers<[1], [0], [0], [1], [0, 0, 1, 1], [], []>} : vector<1x128xbf16>, vector<128x64xbf16>, vector<1x64xf32> -> vector<1x64xf32>
      %c0_25 = arith.constant 0 : index
      %c0_26 = arith.constant 0 : index
      %29 = vector.load %arg8[%c0_25, %c0_26] : memref<1x64xf32, #tpu.memory_space<vmem>>, vector<1x64xf32>
      %30 = arith.addf %28, %29 : vector<1x64xf32>
      %cst_27 = arith.constant 0.000000e+00 : f32
      %31 = vector.broadcast %cst_27 : f32 to vector<1x64xf32>
      %32 = arith.maximumf %30, %31 : vector<1x64xf32>
      %33 = arith.truncf %32 : vector<1x64xf32> to vector<1x64xbf16>
      %c0_28 = arith.constant 0 : index
      %c0_29 = arith.constant 0 : index
      %34 = vector.load %arg9[%c0_28, %c0_29] : memref<64x128xbf16, #tpu.memory_space<vmem>>, vector<64x128xbf16>
      %cst_30 = arith.constant dense<0.000000e+00> : vector<1x128xf32>
      %35 = tpu.matmul %33, %34, %cst_30 {dimension_numbers = #tpu.dot_dimension_numbers<[1], [0], [0], [1], [0, 0, 1, 1], [], []>} : vector<1x64xbf16>, vector<64x128xbf16>, vector<1x128xf32> -> vector<1x128xf32>
      %c0_31 = arith.constant 0 : index
      %c0_32 = arith.constant 0 : index
      %36 = vector.load %arg10[%c0_31, %c0_32] : memref<1x128xf32, #tpu.memory_space<vmem>>, vector<1x128xf32>
      %37 = arith.addf %35, %36 : vector<1x128xf32>
      %38 = vector.shape_cast %37 : vector<1x128xf32> to vector<1x1x128xf32>
      %c0_33 = arith.constant 0 : index
      %c0_34 = arith.constant 0 : index
      %c0_35 = arith.constant 0 : index
      %39 = vector.load %arg11[%c0_33, %c0_34, %c0_35] : memref<1x1x128xf32, #tpu.memory_space<vmem>>, vector<1x1x128xf32>
      tpu.vector_store %arg11[%c0_33, %c0_34, %c0_35], %38 {strides = array<i32>} : memref<1x1x128xf32, #tpu.memory_space<vmem>>, vector<1x1x128xf32>,
    } else {
    }
    return
  }
  func.func @transform_0(%arg0: i32, %arg1: i32) -> (i32, i32, i32) {
    %c0_i32 = arith.constant 0 : i32
    %c0_i32_0 = arith.constant 0 : i32
    return %arg0, %arg1, %c0_i32 : i32, i32, i32
  }
  func.func @transform_1(%arg0: i32, %arg1: i32) -> (i32, i32) {
    %c0_i32 = arith.constant 0 : i32
    %c0_i32_0 = arith.constant 0 : i32
    %c0_i32_1 = arith.constant 0 : i32
    return %c0_i32, %c0_i32_0 : i32, i32
  }
  func.func @transform_2(%arg0: i32, %arg1: i32) -> (i32, i32) {
    %c0_i32 = arith.constant 0 : i32
    %c0_i32_0 = arith.constant 0 : i32
    %c0_i32_1 = arith.constant 0 : i32
    return %c0_i32, %c0_i32_0 : i32, i32
  }
  func.func @transform_3(%arg0: i32, %arg1: i32) -> (i32, i32) {
    %c0_i32 = arith.constant 0 : i32
    %c0_i32_0 = arith.constant 0 : i32
    %c0_i32_1 = arith.constant 0 : i32
    return %c0_i32, %c0_i32_0 : i32, i32
  }
  func.func @transform_4(%arg0: i32, %arg1: i32) -> (i32, i32) {
    %c0_i32 = arith.constant 0 : i32
    %c0_i32_0 = arith.constant 0 : i32
    %c0_i32_1 = arith.constant 0 : i32
    return %c0_i32, %c0_i32_0 : i32, i32
  }
  func.func @transform_5(%arg0: i32, %arg1: i32) -> (i32, i32) {
    %c0_i32 = arith.constant 0 : i32
    %c0_i32_0 = arith.constant 0 : i32
    %c0_i32_1 = arith.constant 0 : i32
    return %c0_i32, %c0_i32_0 : i32, i32
  }
  func.func @transform_6(%arg0: i32, %arg1: i32) -> (i32, i32) {
    %c0_i32 = arith.constant 0 : i32
    %c0_i32_0 = arith.constant 0 : i32
    %c0_i32_1 = arith.constant 0 : i32
    return %c0_i32, %c0_i32_0 : i32, i32
  }
  func.func @transform_7(%arg0: i32, %arg1: i32) -> (i32, i32) {
    %c0_i32 = arith.constant 0 : i32
    %c0_i32_0 = arith.constant 0 : i32
    %c0_i32_1 = arith.constant 0 : i32
    return %c0_i32, %c0_i32_0 : i32, i32
  }
  func.func @transform_8(%arg0: i32, %arg1: i32) -> (i32, i32) {
    %c0_i32 = arith.constant 0 : i32
    %c0_i32_0 = arith.constant 0 : i32
    %c0_i32_1 = arith.constant 0 : i32
    return %c0_i32, %c0_i32_0 : i32, i32
  }
  func.func @transform_9(%arg0: i32, %arg1: i32) -> (i32, i32, i32) {
    %c0_i32 = arith.constant 0 : i32
    %c0_i32_0 = arith.constant 0 : i32
    %c0_i32_1 = arith.constant 0 : i32
    return %arg0, %c0_i32, %c0_i32_0 : i32, i32, i32
  }
}

</mosaic_0001>

<bundles_post_ra>
// kernel: clip_model_forward.1
= control target key start
LH: loop header
LB: loop body
LE: loop exit
PB: predicated region body
PF: predicated region fallthrough
CT: control target
= control target key end

     0   :  { %14 = vsyncpa [#allocation4], 0  ;;  %s1484_s0 = inlined_call_operand.vmem [shape: bf16[2,16,128], index: 0, kind: input, shape index: {}]   ;;  %s1485_s1 = inlined_call_operand.vmem [shape: bf16[128,128], index: 1, kind: input, shape index: {}]   ;;  %s1486_s2 = inlined_call_operand.vmem [shape: f32[1,128], index: 2, kind: input, shape index: {}]   ;;  %s1487_s3 = inlined_call_operand.vmem [shape: bf16[128,128], index: 3, kind: input, shape index: {}]   ;;  %s1488_s4 = inlined_call_operand.vmem [shape: f32[1,128], index: 4, kind: input, shape index: {}]   ;;  %s1489_s5 = inlined_call_operand.vmem [shape: bf16[128,64], index: 5, kind: input, shape index: {}]   ;;  %s1490_s6 = inlined_call_operand.vmem [shape: f32[1,64], index: 6, kind: input, shape index: {}]   ;;  %s1491_s7 = inlined_call_operand.vmem [shape: bf16[64,128], index: 7, kind: input, shape index: {}]   ;;  %s1492_s8 = inlined_call_operand.vmem [shape: f32[1,128], index: 8, kind: input, shape index: {}]   ;;  %s1493_s9 = inlined_call_operand.hbm [shape: f32[2,1,128], index: 9, kind: output, shape index: {}]  }
   0x1   :  { %16 = vsyncpa [#allocation4 + $0x1], 0  ;;  %s1239_s30 = smov 0   ;;  %s1241_s10 = smov 0  }
   0x2   :  { %s1243_s11 = smov 0   ;;  %s1245_s12 = smov 0  }
   0x3   :  { %s1247_s13 = smov 0   ;;  %s1249_s14 = smov 0  }
   0x4 LB: > { %s874_s15 = sadd.s32 4294967295, %s1184_s14   ;;  %s875_s16 = sadd.s32 4294967294, %s1184_s14   ;;  %s1184_s14 = sphi %s1249_s14, %s22_s14   ;;  %s1180_s13 = sphi %s1247_s13, %s1500_s13   ;;  %s1176_s12 = sphi %s1245_s12, %s1499_s12   ;;  %s1172_s11 = sphi %s1243_s11, %s1498_s11   ;;  %s1168_s10 = sphi %s1241_s10, %s1497_s10   ;;  %s1164_s30 = sphi %s1239_s30, %s1496_s30  }
   0x5   : > { %s34_s17 = sadd.s32 1, %s1180_s13  ;;  %s237_s18 = sadd.s32 1, %s1172_s11 }
   0x6   : > { %p36_p0 = scmp.ge.s32.totalorder %s34_s17, 2  ;;  %p247_p1 = scmp.ne.s32.totalorder %s1172_s11, %s1168_s10 }
   0x7   : > { %p248_p2 = scmp.eq.s32.totalorder %s874_s15, 1  ;;  %p253_p3 = scmp.ne.s32.totalorder %s1168_s10, %s1164_s30 }
   0x8   : > { %s1502_s17 = smov (%p36_p0, %s34_s17), 0  ;;  %p254_p5 = scmp.eq.s32.totalorder %s875_s16, 1 }
   0x9   : > { %p1279_p4 = por %p248_p2, %p247_p1  ;;  %s234_s20 = ssub.s32 %s1180_s13, %s1502_s17 }
   0xa   : > { %p878_p6 = scmp.ge.s32.totalorder %s1184_s14, 1  ;;  %p235_p7 = scmp.eq.s32.totalorder %s234_s20, 0 }
   0xb   : > { %p1286_p8 = por %p254_p5, %p253_p3  ;;  %p309_p9 = scmp.lt.s32.totalorder %s1184_s14, 3 }
   0xc   : > { %s1292_s22 = scalar_select %p235_p7, %s1172_s11, %s237_s18  }
   0xd   : > { %p310_p10 = pnand %p878_p6, %p309_p9 }
   0xe   : > { %v1077_v0 = vld [vmem:[%s1485_s1] sm:$0xff] (!%p310_p10)   ;;  %v1186_v1 = vmov (!%p310_p10), 0.0   ;;  %v1078_v2 = vld [vmem:[%s1485_s1 + $0x8] sm:$0xff] (!%p310_p10)   ;;  %vm1187_vm0 = vmmov (!%p310_p10), 0   ;;  %p349_p11 = scmp.lt.s32.totalorder (!%p310_p10), %s1176_s12, 1  ;;  %v1079_v3 = vld [vmem:[%s1485_s1 + $0x10] sm:$0xff] (!%p310_p10)  }
   0xf   : > { %313 = sbr.rel (%p310_p10) target bundleno = 953 (0x3b9), region = 56  ;;  %948 = vmatprep.subr.bf16.mxu0 (!%p310_p10), %v1186_v1  ;;  %363 = vst [vmem:[#allocation2] sm:$0x1] (!%p310_p10), %v1186_v1  ;;  %968 = vmatprep.subr.bf16.mxu1 (!%p310_p10), %v1186_v1  ;;  %v1080_v4 = vld [vmem:[%s1485_s1 + $0x18] sm:$0xff] (!%p310_p10)   ;;  %v1081_v5 = vld [vmem:[%s1485_s1 + $0x20] sm:$0xff] (!%p310_p10)   ;;  %v1082_v6 = vld [vmem:[%s1485_s1 + $0x28] sm:$0xff] (!%p310_p10)  }
  0x10   : > { %949 = vmatpush3.bf16.msra.mxu0 (!%p310_p10), %v1077_v0  ;;  %964 = vmatprep.mubr.msk.bf16.mxu0 (!%p310_p10), %vm1187_vm0, %v1186_v1  ;;  %v1083_v7 = vld [vmem:[%s1485_s1 + $0x30] sm:$0xff] (!%p310_p10)   ;;  %v1084_v8 = vld [vmem:[%s1485_s1 + $0x38] sm:$0xff] (!%p310_p10)   ;;  %v1086_v10 = vld [vmem:[%s1487_s3] sm:$0xff] (!%p310_p10)   ;;  %vm747_vm1 = vcmask (!%p310_p10), 523264   ;;  %s346_s25 = sand.u32 (!%p310_p10), 1, %s1168_s10   ;;  %s1188_s24 = smov (!%p310_p10), [#allocation3]  }
  0x11   : > { %950 = vmatprep.subr.bf16.mxu0 (!%p310_p10), %v1186_v1  ;;  %984 = vmatprep.mubr.msk.bf16.mxu1 (!%p310_p10), %vm1187_vm0, %v1186_v1  ;;  %v1087_v11 = vld [vmem:[%s1487_s3 + $0x8] sm:$0xff] (!%p310_p10)   ;;  %v1088_v12 = vld [vmem:[%s1487_s3 + $0x10] sm:$0xff] (!%p310_p10)   ;;  %v1089_v13 = vld [vmem:[%s1487_s3 + $0x18] sm:$0xff] (!%p310_p10)   ;;  %s347_s28 = scalar_lea.vmem (!%p310_p10), [#allocation3], %s346_s25  ;;  %s793_s23 = scalar_lea.sflag (!%p310_p10), [#allocation4], %s346_s25 }
  0x12   : > { %969 = vmatpush3.bf16.msra.mxu1 (!%p310_p10), %v1086_v10  ;;  %v1090_v14 = vld [vmem:[%s1487_s3 + $0x20] sm:$0xff] (!%p310_p10)   ;;  %v1091_v15 = vld [vmem:[%s1487_s3 + $0x28] sm:$0xff] (!%p310_p10)   ;;  %v1092_v16 = vld [vmem:[%s1487_s3 + $0x30] sm:$0xff] (!%p310_p10)   ;;  %s805_s29 = sshll.u32 (!%p310_p10), %s347_s28, 4  ;;  %s1110_s26 = sshll.u32 (!%p310_p10), %s1188_s24, 4  ;;  %s1439_s29 = int_to_ptr.vmem [resolvable:$true] %s805_s29  ;;  %s1111_s26 = int_to_ptr.vmem [resolvable:$false] %s1110_s26 }
  0x13   : > { %970 = vmatprep.subr.bf16.mxu1 (!%p310_p10), %v1186_v1  ;;  %v1093_v17 = vld [vmem:[%s1487_s3 + $0x38] sm:$0xff] (!%p310_p10)   ;;  %v1094_v18 = vld [vmem:[%s1489_s5] sm:$0xff] (!%p310_p10)   ;;  %v1095_v19 = vld [vmem:[%s1489_s5 + $0x8] sm:$0xff] (!%p310_p10)   ;;  %p1113_p1 = scmp.lt.s32.totalorder (!%p310_p10), %s1439_s29, %s1111_s26 }
  0x14   : > { %951 = vmatpush3.bf16.msra.mxu0 (!%p310_p10), %v1078_v2  ;;  %v1096_v20 = vld [vmem:[%s1489_s5 + $0x10] sm:$0xff] (!%p310_p10)   ;;  %v1097_v21 = vld [vmem:[%s1489_s5 + $0x18] sm:$0xff] (!%p310_p10)   ;;  %v1098_v22 = vld [vmem:[%s1489_s5 + $0x20] sm:$0xff] (!%p310_p10)  }
  0x15   : > { %952 = vmatprep.subr.bf16.mxu0 (!%p310_p10), %v1186_v1  ;;  %v1099_v23 = vld [vmem:[%s1489_s5 + $0x28] sm:$0xff] (!%p310_p10)   ;;  %v1100_v24 = vld [vmem:[%s1489_s5 + $0x30] sm:$0xff] (!%p310_p10)   ;;  %v881_v25 = vld [vmem:[%s1486_s2] ss:$0 sm:$0xff] (!%p310_p10) }
  0x16   : > { %s350_s27 = scalar_select %p349_p11, %s1176_s12, 1  ;;  %971 = vmatpush3.bf16.msra.mxu1 %v1087_v11  ;;  %v486_v40 = vld [vmem:[#allocation2] sm:$0x1]  ;;  %v1101_v45 = vld [vmem:[%s1489_s5 + $0x38] sm:$0xff]   ;;  %v1103_v47 = vld [vmem:[%s1491_s7 + $0x8] sm:$0xff]  }
  0x17   : > { %972 = vmatprep.subr.bf16.mxu1 %v1186_v1  ;;  %v1102_v46 = vld [vmem:[%s1491_s7] sm:$0xff]   ;;  %v1104_v55 = vld [vmem:[%s1491_s7 + $0x10] sm:$0xff]   ;;  %v1105_v56 = vld [vmem:[%s1491_s7 + $0x18] sm:$0xff]  }
  0x18   : > { %s915_s15 = sshll.u32 %s350_s27, 3  ;;  %953 = vmatpush3.bf16.msra.mxu0 %v1079_v3  ;;  %v517_v48 = vld [vmem:[%s1488_s4] sm:$0x1]  ;;  %s912_s27 = sshll.u32 %s1176_s12, 4 }
  0x19   : > { %s356_s20 = scalar_lea.vmem %s1484_s0, %s915_s15  ;;  %954 = vmatprep.subr.bf16.mxu0 %v1186_v1  ;;  %v623_v57 = vld [vmem:[%s1490_s6] sm:$0x1]  ;;  %s1437_s18 = scalar_lea.hbm %s1493_s9, %s912_s27 }
  0x1a   : > { %v1085_v9 = vld [vmem:[%s356_s20] sm:$0xff]   ;;  %973 = vmatpush3.bf16.msra.mxu1 %v1088_v12  ;;  %s1106_s12 = scalar_lea.vmem %s1439_s29, 16  ;;  %s1112_s20 = scalar_lea.vmem %s1111_s26, 32 }
  0x1b   : > { %974 = vmatprep.subr.bf16.mxu1 %v1186_v1  ;;  %p1107_p12 = scmp.ne.s32.totalorder %s1439_s29, %s1106_s12  ;;  %p1114_p2 = scmp.lt.s32.totalorder %s1112_s20, %s1106_s12 }
  0x1c   : > { %955 = vmatpush3.bf16.msra.mxu0 %v1080_v4 }
  0x1d   : > { %956 = vmatprep.subr.bf16.mxu0 %v1186_v1  ;;  %p1108_p13 = pnand %p1107_p12, %p1279_p4  ;;  %p1115_p3 = por %p1114_p2, %p1113_p1 }
  0x1e   : > { %975 = vmatpush3.bf16.msra.mxu1 %v1089_v13 }
  0x1f   : > { %976 = vmatprep.subr.bf16.mxu1 %v1186_v1  ;;  %p1109_p0 = pneg %p1108_p13 }
  0x20   : > { %957 = vmatpush3.bf16.msra.mxu0 %v1081_v5 }
  0x21   : > { %958 = vmatprep.subr.bf16.mxu0 %v1186_v1  ;;  %p1116_p5 = pnand %p1115_p3, %p1109_p0 }
  0x22   : > { %977 = vmatpush3.bf16.msra.mxu1 %v1090_v14 }
  0x23   : > { %978 = vmatprep.subr.bf16.mxu1 %v1186_v1 }
  0x24   : > { %959 = vmatpush3.bf16.msra.mxu0 %v1082_v6 }
  0x25   : > { %960 = vmatprep.subr.bf16.mxu0 %v1186_v1 }
  0x26   : > { %979 = vmatpush3.bf16.msra.mxu1 %v1091_v15 }
  0x27   : > { %980 = vmatprep.subr.bf16.mxu1 %v1186_v1 }
  0x28   : > { %961 = vmatpush3.bf16.msra.mxu0 %v1083_v7 }
  0x29   : > { %962 = vmatprep.subr.bf16.mxu0 %v1186_v1 }
  0x2a   : > { %981 = vmatpush3.bf16.msra.mxu1 %v1092_v16 }
  0x2b   : > { %982 = vmatprep.subr.bf16.mxu1 %v1186_v1 }
  0x2c   : > { %963 = vmatpush3.bf16.msra.mxu0 %v1084_v8 }
  0x2d   : > { %988 = vmatprep.subr.bf16.mxu0 %v1186_v1 }
  0x2e   : > { %983 = vmatpush3.bf16.msra.mxu1 %v1093_v17 }
  0x2f   : > { %965 = vmatmul.mubr.bf16.vlgmr.msra.gmra.mrb[0].mxu0 %v1085_v9  ;;  %1008 = vmatprep.subr.bf16.mxu1 %v1186_v1 }
  0x30   : > { %1004 = vmatprep.mubr.msk.bf16.mxu0 %vm1187_vm0, %v1186_v1  ;;  %989 = vmatpush3.bf16.msra.mxu0 %v1094_v18 }
  0x31   : > { %990 = vmatprep.subr.bf16.mxu0 %v1186_v1 }
  0x34   : > { %991 = vmatpush3.bf16.msra.mxu0 %v1095_v19 }
  0x35   : > { %992 = vmatprep.subr.bf16.mxu0 %v1186_v1 }
  0x38   : > { %993 = vmatpush3.bf16.msra.mxu0 %v1096_v20 }
  0x39   : > { %994 = vmatprep.subr.bf16.mxu0 %v1186_v1 }
  0x3c   : > { %995 = vmatpush3.bf16.msra.mxu0 %v1097_v21 }
  0x3d   : > { %996 = vmatprep.subr.bf16.mxu0 %v1186_v1 }
  0x40   : > { %997 = vmatpush3.bf16.msra.mxu0 %v1098_v22 }
  0x41   : > { %998 = vmatprep.subr.bf16.mxu0 %v1186_v1 }
  0x44   : > { %999 = vmatpush3.bf16.msra.mxu0 %v1099_v23 }
  0x45   : > { %1000 = vmatprep.subr.bf16.mxu0 %v1186_v1 }
  0x48   : > { %1001 = vmatpush3.bf16.msra.mxu0 %v1100_v24 }
  0x49   : > { %1002 = vmatprep.subr.bf16.mxu0 %v1186_v1 }
  0x4c   : > { %1003 = vmatpush3.bf16.msra.mxu0 %v1101_v45 }
 0x102   : > { %v477_v26 = vpop.f32.mrb[0].mxu0 }
 0x103   : > { %v478_v27 = vadd.f32 %v881_v25, %v477_v26  ;;  %v966_v28 = vpop.f32.mrb[1].mxu0 }
 0x104   : > { %v480_v29 = vpop.f32.mrb[2].mxu0 }
 0x105   : > { %v481_v30 = vadd.f32 %v881_v25, %v480_v29  ;;  %v967_v31 = vpop.f32.mrb[3].mxu0  ;;  %v484_v32 = vmax.f32 %v478_v27, 0.0 }
 0x107   : > { %v485_v33 = vmax.f32 %v481_v30, 0.0 }
 0x109   : > { %v487_v34 = vadd.f32 %v485_v33, %v484_v32 }
 0x10b   : > { %v488_v35 = vrot.slane %v487_v34, 4 }
 0x10d   : > { %v489_v36 = vadd.f32 %v488_v35, %v487_v34 }
 0x10f   : > { %v490_v37 = vrot.slane %v489_v36, 2 }
 0x111   : > { %v491_v38 = vadd.f32 %v490_v37, %v489_v36 }
 0x113   : > { %v492_v39 = vrot.slane %v491_v38, 1 }
 0x115   : > { %v493_v41 = vadd.f32 %v492_v39, %v491_v38 }
 0x117   : > { %v494_v42 = vadd.f32 %v493_v41, %v486_v40 }
 0x119   : > { %495 = vst [vmem:[#allocation2] sm:$0x1] %v494_v42 }
 0x120   : > { %v499_v43 = vld [vmem:[#allocation2] sm:$0x1] }
 0x121   : > { %v500_v44 = vpack.c.bf16 %v499_v43, %v499_v43 }
 0x123   : > { %985 = vmatmul.mubr.bf16.vlgmr.msra.gmra.mrb[0].mxu1 %v500_v44 }
 0x124   : > { %1016 = vmatprep.mubr.msk.bf16.mxu1 %vm1187_vm0, %v1186_v1  ;;  %1009 = vmatpush3.bf16.msra.mxu1 %v1102_v46 }
 0x125   : > { %1010 = vmatprep.subr.bf16.mxu1 %v1186_v1 }
 0x128   : > { %1011 = vmatpush3.bf16.msra.mxu1 %v1103_v47 }
 0x129   : > { %1012 = vmatprep.subr.bf16.mxu1 %v1186_v1 }
 0x12c   : > { %1013 = vmatpush3.bf16.msra.mxu1 %v1104_v55 }
 0x12d   : > { %1014 = vmatprep.subr.bf16.mxu1 %v1186_v1  ;;  %v722_v1 = vld [vmem:[%s1492_s8] sm:$0x1] }
 0x130   : > { %1015 = vmatpush3.bf16.msra.mxu1 %v1105_v56 }
 0x1f6   : > { %v600_v49 = vpop.f32.mrb[0].mxu1 }
 0x1f7   : > { %v601_v50 = vadd.f32 %v600_v49, %v517_v48  ;;  %v986_v51 = vpop.f32.mrb[1].mxu1 }
 0x1f8   : > { %v603_v52 = vpop.f32.mrb[2].mxu1 }
 0x1f9   : > { %v606_v53 = vpack.c.bf16 %v601_v50, %v601_v50  ;;  %v987_v54 = vpop.f32.mrb[3].mxu1 }
 0x1fb   : > { %1005 = vmatmul.mubr.bf16.vlgmr.msra.gmra.mrb[4].mxu0 %v606_v53 }
 0x2ce   : > { %v706_v58 = vpop.f32.mrb[4].mxu0 }
 0x2cf   : > { %v707_v59 = vadd.f32 %v706_v58, %v623_v57  ;;  %v1006_v60 = vpop.f32.mrb[5].mxu0 }
 0x2d0   : > { %v709_v61 = vpop.f32.mrb[6].mxu0 }
 0x2d1   : > { %v712_v62 = vmax.f32 %v707_v59, 0.0  ;;  %v1007_v63 = vpop.f32.mrb[7].mxu0 }
 0x2d3   : > { %v713_v0 = vpack.c.bf16 %v712_v62, %v712_v62 }
 0x2d5   : > { %1017 = vmatmul.mubr.msk.bf16.vlgmr.msra.gmra.mrb[4].mxu1 %vm747_vm1, %v713_v0 }
 0x3a8   : > { %v785_v2 = vpop.f32.mrb[4].mxu1 }
 0x3a9   : > { %v786_v3 = vadd.f32 %v785_v2, %v722_v1  ;;  %v1018_v4 = vpop.f32.mrb[5].mxu1 }
 0x3aa   : > { %v788_v5 = vpop.f32.mrb[6].mxu1 }
 0x3ab   : > { %791 = vst [vmem:[%s347_s28] sm:$0x1] %v786_v3  ;;  %v1019_v6 = vpop.f32.mrb[7].mxu1 }
 0x3ac   : > { %1119 = shalt.err (!%p1116_p5)
}
 0x3ad   : > { %s1120_s25 = scalar_lea.hbm %s1437_s18, 16  ;;  %s1124_s15 = scalar_lea.hbm %s1493_s9, 32 }
 0x3ae   : > { %p1121_p6 = scmp.ne.s32.totalorder %s1437_s18, %s1120_s25  ;;  %p1125_p10 = scmp.lt.u32.totalorder %s1437_s18, %s1493_s9 }
 0x3af   : > { %p1126_p11 = scmp.lt.u32.totalorder %s1124_s15, %s1120_s25  ;;  %p1128_p13 = scmp.lt.u32.totalorder %s1120_s25, %s1437_s18 }
 0x3b0   : > { %p1122_p7 = pnand %p1121_p6, %p1279_p4 }
 0x3b1   : > { %p1127_p12 = por %p1126_p11, %p1125_p10 }
 0x3b2   : > { %p1123_p9 = pneg %p1122_p7 }
 0x3b3   : > { %p1129_p0 = por %p1128_p13, %p1127_p12 }
 0x3b5   : > { %p1130_p1 = pnand %p1129_p0, %p1123_p9 }
 0x3b7   : > { %1133 = shalt.err (!%p1130_p1)
}
 0x3b8   : > { %1020 = dma.vmem_to_hbm [thread:$0]  (%p1279_p4), %s1439_s29, 16, %s1437_s18, %s793_s23  }
 0x3b9 PF: > { %p1026_p2 = scmp.ge.s32.totalorder %s1184_s14, 2  ;;  %s817_s12 = sand.u32 1, %s1164_s30  }
 0x3ba   : > { %s818_s26 = scalar_lea.sflag [#allocation4], %s817_s12 }
 0x3bb   : > { %p1023_p3 = pnand %p1026_p2, %p1286_p8 }
 0x3bd   : > { %1159 = dma.done.wait (!%p1023_p3), %s818_s26, 16  }
 0x3be   : > { %1161 = vsyncadd (!%p1023_p3), %s818_s26, 4294967280  ;;  %s22_s14 = sadd.s32 1, %s1184_s14   ;;  %s1496_s30 = smov %s1168_s10 }
 0x3bf   : > { %p19_p5 = scmp.ge.s32.totalorder %s22_s14, 4   ;;  %s1497_s10 = smov %s1172_s11 }
 0x3c0   : > { %s1498_s11 = smov %s1292_s22  ;;  %s1499_s12 = smov %s1180_s13 }
 0x3c1   : > { %s1500_s13 = smov %s1502_s17  ;;  %21 = sbr.rel (!%p19_p5) target bundleno = 4 (0x4), region = 99 }
 0x3c8   :  { %822 = vsyncpa [#allocation4], 1 }
 0x3c9   :  { %824 = vsyncpa [#allocation4 + $0x1], 1 }

</bundles_post_ra>
